<compile_context>
chip_gen: v6e
topology: v6e:2x2x1
jax: 0.10.0
libtpu: 0.0.40
codegen_flags: <defaults>
</compile_context>

<pallas_src>
import jax
import jax.numpy as jnp
from jax.experimental import pallas as pl
from jax.experimental.pallas import tpu as pltpu


def _make_kernel(block_b, n_pts, t_pts, compute_dtype):
    """Build the fused encoder+decoder kernel for one batch block."""
    cdt = compute_dtype

    def kernel(p_ref, x_ref,
               w0_ref, b0_ref, w1_ref, b1_ref, wc_ref, bc_ref,
               wp_ref, wcf_ref, bcond_ref, wd1_ref, bd1_ref,
               wo_ref, bo_ref, o_ref):
        f32 = jnp.float32
        x = x_ref[...].astype(cdt)               # (Bblk*N, 3)
        p = p_ref[...].astype(cdt)               # (Bblk*T, 3)

        # ---------------- encoder: PointNet ----------------
        # TODO(synk): at production sizes (N ~ 3k-30k, He >= 128) stream N in tiles
        # with a running max-pool accumulator in VMEM scratch instead of
        # materializing the full (Bblk*N, He) activations (v7x 64 MiB VMEM budget).
        h0 = jnp.maximum(
            jnp.dot(x, w0_ref[...], preferred_element_type=f32) + b0_ref[...], 0.0)
        h1 = jnp.maximum(
            jnp.dot(h0.astype(cdt), w1_ref[...], preferred_element_type=f32)
            + b1_ref[...], 0.0)                                           # (Bblk*N, He)
        pooled = jnp.max(h1.reshape(block_b, n_pts, -1), axis=1)          # (Bblk, He)
        c = (jnp.dot(pooled.astype(cdt), wc_ref[...], preferred_element_type=f32)
             + bc_ref[...])                                               # (Bblk, C)

        # ---------------- decoder: conditioned MLP ----------------
        # fc_p bias + fc_c bias already folded into bcond_ref host-side.
        # TODO(synk): when T is tiled for production query counts, compute `cond`
        # only under pl.when(t_idx == 0) and persist it in VMEM scratch across the
        # T-tile ("arbitrary") grid axis so the encoder is not recomputed per tile.
        cond = (jnp.dot(c.astype(cdt), wcf_ref[...], preferred_element_type=f32)
                + bcond_ref[...])                                         # (Bblk, Hd)

        net = jnp.dot(p, wp_ref[...], preferred_element_type=f32)         # (Bblk*T, Hd)
        net = jnp.maximum(net.reshape(block_b, t_pts, -1) + cond[:, None, :], 0.0)
        net = net.reshape(block_b * t_pts, -1)
        net = jnp.maximum(
            jnp.dot(net.astype(cdt), wd1_ref[...], preferred_element_type=f32)
            + bd1_ref[...], 0.0)                                           # (Bblk*T, Hd)

        # fc_out has output width 1: VPU broadcast-multiply + reduce over Hd,
        # then write a lane-dense (Bblk, T) slab.
        net3 = net.reshape(block_b, t_pts, -1)                             # (Bblk, T, Hd)
        logits = jnp.sum(net3 * wo_ref[...], axis=-1) + bo_ref[...]        # (Bblk, T)
        o_ref[...] = logits.astype(o_ref.dtype)

    return kernel


def conv_occupancy_network_forward(p, inputs, params, *, compute_dtype=jnp.float32):
    """p: (B, T, 3), inputs: (B, N, 3) -> occupancy logits (B, T)."""
    B, T, _ = p.shape
    _, N, _ = inputs.shape

    # Fold batch into the M dimension; one grid step = one block of batch elements.
    if B <= 8:
        block_b = B                      # block == full dim satisfies tiling rules
    else:
        # TODO(synk): pad ragged batches to a multiple of 8.
        assert B % 8 == 0, "batch must be a multiple of 8 when B > 8"
        block_b = 8
    grid_b = B // block_b

    p_flat = p.reshape(B * T, 3).astype(compute_dtype)
    x_flat = inputs.reshape(B * N, 3).astype(compute_dtype)

    def as_compute(w):
        return w.astype(compute_dtype)

    # Fold fc_p bias into the conditioning bias (both broadcast over (B, T, Hd)).
    b_cond = (params["bcf"] + params["bp"]).astype(jnp.float32)  # (1, Hd)
    wo_row = params["wo"].reshape(1, -1).astype(jnp.float32)     # (1, Hd) - VPU operand
    bo = params["bo"].reshape(1, 1).astype(jnp.float32)

    args = [
        p_flat, x_flat,
        as_compute(params["w0"]), params["b0"],
        as_compute(params["w1"]), params["b1"],
        as_compute(params["wc"]), params["bc"],
        as_compute(params["wp"]),
        as_compute(params["wcf"]), b_cond,
        as_compute(params["wd1"]), params["bd1"],
        wo_row, bo,
    ]

    def rep_spec(arr):
        # weights/biases: same (full) block every grid step
        return pl.BlockSpec(arr.shape, lambda b: (0, 0))

    in_specs = [
        pl.BlockSpec((block_b * T, 3), lambda b: (b, 0)),   # query points
        pl.BlockSpec((block_b * N, 3), lambda b: (b, 0)),   # conditioning cloud
    ] + [rep_spec(a) for a in args[2:]]

    kernel = _make_kernel(block_b, N, T, compute_dtype)

    out = pl.pallas_call(
        kernel,
        out_shape=jax.ShapeDtypeStruct((B, T), jnp.float32),      # lane-dense output
        grid_spec=pltpu.PrefetchScalarGridSpec(
            num_scalar_prefetch=0,
            grid=(grid_b,),
            in_specs=in_specs,
            out_specs=pl.BlockSpec((block_b, T), lambda b: (b, 0)),
        ),
        compiler_params=pltpu.CompilerParams(
            dimension_semantics=("parallel",),   # batch-block axis shards across TCs on v7x
        ),
    )(*args)
    return out


def _reference_forward(p, inputs, params):
    """Pure-JAX reference with identical semantics (for correctness check)."""
    relu = lambda v: jnp.maximum(v, 0.0)
    h0 = relu(inputs @ params["w0"] + params["b0"])          # (B, N, He)
    h1 = relu(h0 @ params["w1"] + params["b1"])              # (B, N, He)
    pooled = jnp.max(h1, axis=1)                             # (B, He)
    c = pooled @ params["wc"] + params["bc"]                 # (B, C)
    cond = c @ params["wcf"] + params["bcf"]                 # (B, Hd)
    net = relu(p @ params["wp"] + params["bp"] + cond[:, None, :])
    net = relu(net @ params["wd1"] + params["bd1"])
    logits = net @ params["wo"] + params["bo"]               # (B, T, 1)
    return logits[..., 0]


def _init_params(key, hidden_enc=32, c_dim=32, hidden_dec=32):
    ks = jax.random.split(key, 8)

    def lin(k, fan_in, fan_out):
        scale = 1.0 / jnp.sqrt(jnp.float32(fan_in))
        w = jax.random.uniform(k, (fan_in, fan_out), jnp.float32, -scale, scale)
        b = jnp.zeros((1, fan_out), jnp.float32)
        return w, b

    params = {}
    params["w0"],  params["b0"]  = lin(ks[0], 3, hidden_enc)
    params["w1"],  params["b1"]  = lin(ks[1], hidden_enc, hidden_enc)
    params["wc"],  params["bc"]  = lin(ks[2], hidden_enc, c_dim)
    params["wp"],  params["bp"]  = lin(ks[3], 3, hidden_dec)
    params["wcf"], params["bcf"] = lin(ks[4], c_dim, hidden_dec)
    params["wd1"], params["bd1"] = lin(ks[5], hidden_dec, hidden_dec)
    params["wo"],  params["bo"]  = lin(ks[6], hidden_dec, 1)
    return params


if __name__ == "__main__":
    key = jax.random.PRNGKey(0)
    k_p, k_x, k_w = jax.random.split(key, 3)

    B, T, N = 2, 8, 16                 # batch, query points, input points
    p = jax.random.uniform(k_p, (B, T, 3), jnp.float32, -0.5, 0.5)       # sampled points
    inputs = jax.random.uniform(k_x, (B, N, 3), jnp.float32, -0.5, 0.5)  # conditioning cloud
    params = _init_params(k_w)

    ref = _reference_forward(p, inputs, params)

    # f32 path: must match the reference tightly.
    logits = conv_occupancy_network_forward(p, inputs, params)
    logits = jax.block_until_ready(logits)
    assert logits.shape == (B, T)
    assert jnp.allclose(logits, ref, atol=1e-5, rtol=1e-5), "f32 mismatch vs reference"

    # bf16 MXU-operand path (v6e/v7x recommendation): f32 accumulation, loose tolerance.
    logits_bf16 = conv_occupancy_network_forward(
        p, inputs, params, compute_dtype=jnp.bfloat16)
    logits_bf16 = jax.block_until_ready(logits_bf16)
    assert jnp.allclose(logits_bf16, ref, atol=1e-1, rtol=1e-1), "bf16 path diverged"

    # Multi-block grid check (B > 8 -> block_b = 8, grid_b > 1): exercises the
    # batch-block index_maps and the "parallel" grid axis.
    B2 = 16
    p2 = jax.random.uniform(jax.random.PRNGKey(1), (B2, T, 3), jnp.float32, -0.5, 0.5)
    x2 = jax.random.uniform(jax.random.PRNGKey(2), (B2, N, 3), jnp.float32, -0.5, 0.5)
    ref2 = _reference_forward(p2, x2, params)
    out2 = jax.block_until_ready(conv_occupancy_network_forward(p2, x2, params))
    assert jnp.allclose(out2, ref2, atol=1e-5, rtol=1e-5), "multi-block mismatch"

    # TODO(synk): the PyTorch wrapper can also return a Bernoulli distribution over
    # logits (dist.Bernoulli); only the logits hot path is implemented here.
    print("KERNEL_OK")
</pallas_src>

<mosaic_0001>
module attributes {stable_mosaic.version = 11 : i64} {
  func.func @kernel(%arg0: i32, %arg1: memref<16x3xf32, #tpu.memory_space<vmem>>, %arg2: memref<32x3xf32, #tpu.memory_space<vmem>>, %arg3: memref<3x32xf32, #tpu.memory_space<vmem>>, %arg4: memref<1x32xf32, #tpu.memory_space<vmem>>, %arg5: memref<32x32xf32, #tpu.memory_space<vmem>>, %arg6: memref<1x32xf32, #tpu.memory_space<vmem>>, %arg7: memref<32x32xf32, #tpu.memory_space<vmem>>, %arg8: memref<1x32xf32, #tpu.memory_space<vmem>>, %arg9: memref<3x32xf32, #tpu.memory_space<vmem>>, %arg10: memref<32x32xf32, #tpu.memory_space<vmem>>, %arg11: memref<1x32xf32, #tpu.memory_space<vmem>>, %arg12: memref<32x32xf32, #tpu.memory_space<vmem>>, %arg13: memref<1x32xf32, #tpu.memory_space<vmem>>, %arg14: memref<1x32xf32, #tpu.memory_space<vmem>>, %arg15: memref<1x1xf32, #tpu.memory_space<vmem>>, %arg16: memref<2x8xf32, #tpu.memory_space<vmem>>) attributes {dimension_semantics = [#tpu.dimension_semantics<parallel>], iteration_bounds = array<i64: 1>, scalar_prefetch = 0 : i64, scratch_operands = 0 : i64, tpu.core_type = #tpu.core_type<tc>, window_params = [{transform_indices = @transform_0, window_bounds = array<i64: 16, 3>}, {transform_indices = @transform_1, window_bounds = array<i64: 32, 3>}, {pipeline_mode = #tpu.pipeline_mode<synchronous>, transform_indices = @transform_2, window_bounds = array<i64: 3, 32>}, {pipeline_mode = #tpu.pipeline_mode<synchronous>, transform_indices = @transform_3, window_bounds = array<i64: 1, 32>}, {pipeline_mode = #tpu.pipeline_mode<synchronous>, transform_indices = @transform_4, window_bounds = array<i64: 32, 32>}, {pipeline_mode = #tpu.pipeline_mode<synchronous>, transform_indices = @transform_5, window_bounds = array<i64: 1, 32>}, {pipeline_mode = #tpu.pipeline_mode<synchronous>, transform_indices = @transform_6, window_bounds = array<i64: 32, 32>}, {pipeline_mode = #tpu.pipeline_mode<synchronous>, transform_indices = @transform_7, window_bounds = array<i64: 1, 32>}, {pipeline_mode = #tpu.pipeline_mode<synchronous>, transform_indices = @transform_8, window_bounds = array<i64: 3, 32>}, {pipeline_mode = #tpu.pipeline_mode<synchronous>, transform_indices = @transform_9, window_bounds = array<i64: 32, 32>}, {pipeline_mode = #tpu.pipeline_mode<synchronous>, transform_indices = @transform_10, window_bounds = array<i64: 1, 32>}, {pipeline_mode = #tpu.pipeline_mode<synchronous>, transform_indices = @transform_11, window_bounds = array<i64: 32, 32>}, {pipeline_mode = #tpu.pipeline_mode<synchronous>, transform_indices = @transform_12, window_bounds = array<i64: 1, 32>}, {pipeline_mode = #tpu.pipeline_mode<synchronous>, transform_indices = @transform_13, window_bounds = array<i64: 1, 32>}, {pipeline_mode = #tpu.pipeline_mode<synchronous>, transform_indices = @transform_14, window_bounds = array<i64: 1, 1>}, {transform_indices = @transform_15, window_bounds = array<i64: 2, 8>}]} {
    %c0 = arith.constant 0 : index
    %c0_0 = arith.constant 0 : index
    %0 = vector.load %arg2[%c0, %c0_0] : memref<32x3xf32, #tpu.memory_space<vmem>>, vector<32x3xf32>
    %c0_1 = arith.constant 0 : index
    %c0_2 = arith.constant 0 : index
    %1 = vector.load %arg1[%c0_1, %c0_2] : memref<16x3xf32, #tpu.memory_space<vmem>>, vector<16x3xf32>
    %c0_3 = arith.constant 0 : index
    %c0_4 = arith.constant 0 : index
    %2 = vector.load %arg3[%c0_3, %c0_4] : memref<3x32xf32, #tpu.memory_space<vmem>>, vector<3x32xf32>
    %cst = arith.constant dense<0.000000e+00> : vector<32x32xf32>
    %3 = tpu.matmul %0, %2, %cst {dimension_numbers = #tpu.dot_dimension_numbers<[1], [0], [0], [1], [0, 0, 1, 1], [], []>} : vector<32x3xf32>, vector<3x32xf32>, vector<32x32xf32> -> vector<32x32xf32>
    %c0_5 = arith.constant 0 : index
    %c0_6 = arith.constant 0 : index
    %4 = vector.load %arg4[%c0_5, %c0_6] : memref<1x32xf32, #tpu.memory_space<vmem>>, vector<1x32xf32>
    %5 = vector.broadcast %4 : vector<1x32xf32> to vector<32x32xf32>
    %6 = arith.addf %3, %5 : vector<32x32xf32>
    %cst_7 = arith.constant 0.000000e+00 : f32
    %7 = vector.broadcast %cst_7 : f32 to vector<32x32xf32>
    %8 = arith.maximumf %6, %7 : vector<32x32xf32>
    %c0_8 = arith.constant 0 : index
    %c0_9 = arith.constant 0 : index
    %9 = vector.load %arg5[%c0_8, %c0_9] : memref<32x32xf32, #tpu.memory_space<vmem>>, vector<32x32xf32>
    %cst_10 = arith.constant dense<0.000000e+00> : vector<32x32xf32>
    %10 = tpu.matmul %8, %9, %cst_10 {dimension_numbers = #tpu.dot_dimension_numbers<[1], [0], [0], [1], [0, 0, 1, 1], [], []>} : vector<32x32xf32>, vector<32x32xf32>, vector<32x32xf32> -> vector<32x32xf32>
    %c0_11 = arith.constant 0 : index
    %c0_12 = arith.constant 0 : index
    %11 = vector.load %arg6[%c0_11, %c0_12] : memref<1x32xf32, #tpu.memory_space<vmem>>, vector<1x32xf32>
    %12 = vector.broadcast %11 : vector<1x32xf32> to vector<32x32xf32>
    %13 = arith.addf %10, %12 : vector<32x32xf32>
    %cst_13 = arith.constant 0.000000e+00 : f32
    %14 = vector.broadcast %cst_13 : f32 to vector<32x32xf32>
    %15 = arith.maximumf %13, %14 : vector<32x32xf32>
    %16 = vector.shape_cast %15 : vector<32x32xf32> to vector<2x16x32xf32>
    %cst_14 = arith.constant dense<0xFF800000> : vector<2x32xf32>
    %17 = vector.multi_reduction <maximumf>, %16, %cst_14 [1] : vector<2x16x32xf32> to vector<2x32xf32>
    %c0_15 = arith.constant 0 : index
    %c0_16 = arith.constant 0 : index
    %18 = vector.load %arg7[%c0_15, %c0_16] : memref<32x32xf32, #tpu.memory_space<vmem>>, vector<32x32xf32>
    %cst_17 = arith.constant dense<0.000000e+00> : vector<2x32xf32>
    %19 = tpu.matmul %17, %18, %cst_17 {dimension_numbers = #tpu.dot_dimension_numbers<[1], [0], [0], [1], [0, 0, 1, 1], [], []>} : vector<2x32xf32>, vector<32x32xf32>, vector<2x32xf32> -> vector<2x32xf32>
    %c0_18 = arith.constant 0 : index
    %c0_19 = arith.constant 0 : index
    %20 = vector.load %arg8[%c0_18, %c0_19] : memref<1x32xf32, #tpu.memory_space<vmem>>, vector<1x32xf32>
    %21 = vector.broadcast %20 : vector<1x32xf32> to vector<2x32xf32>
    %22 = arith.addf %19, %21 : vector<2x32xf32>
    %c0_20 = arith.constant 0 : index
    %c0_21 = arith.constant 0 : index
    %23 = vector.load %arg10[%c0_20, %c0_21] : memref<32x32xf32, #tpu.memory_space<vmem>>, vector<32x32xf32>
    %cst_22 = arith.constant dense<0.000000e+00> : vector<2x32xf32>
    %24 = tpu.matmul %22, %23, %cst_22 {dimension_numbers = #tpu.dot_dimension_numbers<[1], [0], [0], [1], [0, 0, 1, 1], [], []>} : vector<2x32xf32>, vector<32x32xf32>, vector<2x32xf32> -> vector<2x32xf32>
    %c0_23 = arith.constant 0 : index
    %c0_24 = arith.constant 0 : index
    %25 = vector.load %arg11[%c0_23, %c0_24] : memref<1x32xf32, #tpu.memory_space<vmem>>, vector<1x32xf32>
    %26 = vector.broadcast %25 : vector<1x32xf32> to vector<2x32xf32>
    %27 = arith.addf %24, %26 : vector<2x32xf32>
    %c0_25 = arith.constant 0 : index
    %c0_26 = arith.constant 0 : index
    %28 = vector.load %arg9[%c0_25, %c0_26] : memref<3x32xf32, #tpu.memory_space<vmem>>, vector<3x32xf32>
    %cst_27 = arith.constant dense<0.000000e+00> : vector<16x32xf32>
    %29 = tpu.matmul %1, %28, %cst_27 {dimension_numbers = #tpu.dot_dimension_numbers<[1], [0], [0], [1], [0, 0, 1, 1], [], []>} : vector<16x3xf32>, vector<3x32xf32>, vector<16x32xf32> -> vector<16x32xf32>
    %30 = vector.shape_cast %29 : vector<16x32xf32> to vector<2x8x32xf32>
    %31 = vector.shape_cast %27 : vector<2x32xf32> to vector<2x1x32xf32>
    %32 = vector.broadcast %31 : vector<2x1x32xf32> to vector<2x8x32xf32>
    %33 = arith.addf %30, %32 : vector<2x8x32xf32>
    %cst_28 = arith.constant 0.000000e+00 : f32
    %34 = vector.broadcast %cst_28 : f32 to vector<2x8x32xf32>
    %35 = arith.maximumf %33, %34 : vector<2x8x32xf32>
    %36 = vector.shape_cast %35 : vector<2x8x32xf32> to vector<16x32xf32>
    %c0_29 = arith.constant 0 : index
    %c0_30 = arith.constant 0 : index
    %37 = vector.load %arg12[%c0_29, %c0_30] : memref<32x32xf32, #tpu.memory_space<vmem>>, vector<32x32xf32>
    %cst_31 = arith.constant dense<0.000000e+00> : vector<16x32xf32>
    %38 = tpu.matmul %36, %37, %cst_31 {dimension_numbers = #tpu.dot_dimension_numbers<[1], [0], [0], [1], [0, 0, 1, 1], [], []>} : vector<16x32xf32>, vector<32x32xf32>, vector<16x32xf32> -> vector<16x32xf32>
    %c0_32 = arith.constant 0 : index
    %c0_33 = arith.constant 0 : index
    %39 = vector.load %arg13[%c0_32, %c0_33] : memref<1x32xf32, #tpu.memory_space<vmem>>, vector<1x32xf32>
    %40 = vector.broadcast %39 : vector<1x32xf32> to vector<16x32xf32>
    %41 = arith.addf %38, %40 : vector<16x32xf32>
    %cst_34 = arith.constant 0.000000e+00 : f32
    %42 = vector.broadcast %cst_34 : f32 to vector<16x32xf32>
    %43 = arith.maximumf %41, %42 : vector<16x32xf32>
    %44 = vector.shape_cast %43 : vector<16x32xf32> to vector<2x8x32xf32>
    %c0_35 = arith.constant 0 : index
    %c0_36 = arith.constant 0 : index
    %45 = vector.load %arg14[%c0_35, %c0_36] : memref<1x32xf32, #tpu.memory_space<vmem>>, vector<1x32xf32>
    %46 = vector.shape_cast %45 : vector<1x32xf32> to vector<1x1x32xf32>
    %47 = vector.broadcast %46 : vector<1x1x32xf32> to vector<2x8x32xf32>
    %48 = arith.mulf %44, %47 : vector<2x8x32xf32>
    %cst_37 = arith.constant dense<0.000000e+00> : vector<2x8xf32>
    %49 = vector.multi_reduction <add>, %48, %cst_37 [2] : vector<2x8x32xf32> to vector<2x8xf32>
    %c0_38 = arith.constant 0 : index
    %c0_39 = arith.constant 0 : index
    %50 = vector.load %arg15[%c0_38, %c0_39] : memref<1x1xf32, #tpu.memory_space<vmem>>, vector<1x1xf32>
    %51 = vector.broadcast %50 : vector<1x1xf32> to vector<2x8xf32>
    %52 = arith.addf %49, %51 : vector<2x8xf32>
    %c0_40 = arith.constant 0 : index
    %c0_41 = arith.constant 0 : index
    %53 = vector.load %arg16[%c0_40, %c0_41] : memref<2x8xf32, #tpu.memory_space<vmem>>, vector<2x8xf32>
    tpu.vector_store %arg16[%c0_40, %c0_41], %52 {strides = array<i32>} : memref<2x8xf32, #tpu.memory_space<vmem>>, vector<2x8xf32>,
    return
  }
  func.func @transform_0(%arg0: i32) -> (i32, i32) {
    %c0_i32 = arith.constant 0 : i32
    %c0_i32_0 = arith.constant 0 : i32
    return %arg0, %c0_i32 : i32, i32
  }
  func.func @transform_1(%arg0: i32) -> (i32, i32) {
    %c0_i32 = arith.constant 0 : i32
    %c0_i32_0 = arith.constant 0 : i32
    return %arg0, %c0_i32 : i32, i32
  }
  func.func @transform_2(%arg0: i32) -> (i32, i32) {
    %c0_i32 = arith.constant 0 : i32
    %c0_i32_0 = arith.constant 0 : i32
    %c0_i32_1 = arith.constant 0 : i32
    return %c0_i32, %c0_i32_0 : i32, i32
  }
  func.func @transform_3(%arg0: i32) -> (i32, i32) {
    %c0_i32 = arith.constant 0 : i32
    %c0_i32_0 = arith.constant 0 : i32
    %c0_i32_1 = arith.constant 0 : i32
    return %c0_i32, %c0_i32_0 : i32, i32
  }
  func.func @transform_4(%arg0: i32) -> (i32, i32) {
    %c0_i32 = arith.constant 0 : i32
    %c0_i32_0 = arith.constant 0 : i32
    %c0_i32_1 = arith.constant 0 : i32
    return %c0_i32, %c0_i32_0 : i32, i32
  }
  func.func @transform_5(%arg0: i32) -> (i32, i32) {
    %c0_i32 = arith.constant 0 : i32
    %c0_i32_0 = arith.constant 0 : i32
    %c0_i32_1 = arith.constant 0 : i32
    return %c0_i32, %c0_i32_0 : i32, i32
  }
  func.func @transform_6(%arg0: i32) -> (i32, i32) {
    %c0_i32 = arith.constant 0 : i32
    %c0_i32_0 = arith.constant 0 : i32
    %c0_i32_1 = arith.constant 0 : i32
    return %c0_i32, %c0_i32_0 : i32, i32
  }
  func.func @transform_7(%arg0: i32) -> (i32, i32) {
    %c0_i32 = arith.constant 0 : i32
    %c0_i32_0 = arith.constant 0 : i32
    %c0_i32_1 = arith.constant 0 : i32
    return %c0_i32, %c0_i32_0 : i32, i32
  }
  func.func @transform_8(%arg0: i32) -> (i32, i32) {
    %c0_i32 = arith.constant 0 : i32
    %c0_i32_0 = arith.constant 0 : i32
    %c0_i32_1 = arith.constant 0 : i32
    return %c0_i32, %c0_i32_0 : i32, i32
  }
  func.func @transform_9(%arg0: i32) -> (i32, i32) {
    %c0_i32 = arith.constant 0 : i32
    %c0_i32_0 = arith.constant 0 : i32
    %c0_i32_1 = arith.constant 0 : i32
    return %c0_i32, %c0_i32_0 : i32, i32
  }
  func.func @transform_10(%arg0: i32) -> (i32, i32) {
    %c0_i32 = arith.constant 0 : i32
    %c0_i32_0 = arith.constant 0 : i32
    %c0_i32_1 = arith.constant 0 : i32
    return %c0_i32, %c0_i32_0 : i32, i32
  }
  func.func @transform_11(%arg0: i32) -> (i32, i32) {
    %c0_i32 = arith.constant 0 : i32
    %c0_i32_0 = arith.constant 0 : i32
    %c0_i32_1 = arith.constant 0 : i32
    return %c0_i32, %c0_i32_0 : i32, i32
  }
  func.func @transform_12(%arg0: i32) -> (i32, i32) {
    %c0_i32 = arith.constant 0 : i32
    %c0_i32_0 = arith.constant 0 : i32
    %c0_i32_1 = arith.constant 0 : i32
    return %c0_i32, %c0_i32_0 : i32, i32
  }
  func.func @transform_13(%arg0: i32) -> (i32, i32) {
    %c0_i32 = arith.constant 0 : i32
    %c0_i32_0 = arith.constant 0 : i32
    %c0_i32_1 = arith.constant 0 : i32
    return %c0_i32, %c0_i32_0 : i32, i32
  }
  func.func @transform_14(%arg0: i32) -> (i32, i32) {
    %c0_i32 = arith.constant 0 : i32
    %c0_i32_0 = arith.constant 0 : i32
    %c0_i32_1 = arith.constant 0 : i32
    return %c0_i32, %c0_i32_0 : i32, i32
  }
  func.func @transform_15(%arg0: i32) -> (i32, i32) {
    %c0_i32 = arith.constant 0 : i32
    %c0_i32_0 = arith.constant 0 : i32
    return %arg0, %c0_i32 : i32, i32
  }
}

</mosaic_0001>

<bundles_post_ra>
// kernel: tpu_custom_call.1
= control target key start
LH: loop header
LB: loop body
LE: loop exit
PB: predicated region body
PF: predicated region fallthrough
CT: control target
= control target key end

     0   :  { %s1272_s0 = inlined_call_operand.vmem [shape: f32[16,3], index: 0, kind: input, shape index: {}]   ;;  %s1273_s1 = inlined_call_operand.vmem [shape: f32[32,3], index: 1, kind: input, shape index: {}]   ;;  %s1274_s2 = inlined_call_operand.hbm [shape: f32[3,32], index: 2, kind: input, shape index: {}]   ;;  %s1275_s3 = inlined_call_operand.hbm [shape: f32[1,32], index: 3, kind: input, shape index: {}]   ;;  %s1276_s4 = inlined_call_operand.vmem [shape: f32[32,32], index: 4, kind: input, shape index: {}]   ;;  %s1277_s5 = inlined_call_operand.hbm [shape: f32[1,32], index: 5, kind: input, shape index: {}]   ;;  %s1278_s6 = inlined_call_operand.vmem [shape: f32[32,32], index: 6, kind: input, shape index: {}]   ;;  %s1279_s7 = inlined_call_operand.vmem [shape: f32[1,32], index: 7, kind: input, shape index: {}]   ;;  %s1280_s8 = inlined_call_operand.vmem [shape: f32[3,32], index: 8, kind: input, shape index: {}]   ;;  %s1281_s9 = inlined_call_operand.hbm [shape: f32[32,32], index: 9, kind: input, shape index: {}]   ;;  %s1282_s10 = inlined_call_operand.vmem [shape: f32[1,32], index: 10, kind: input, shape index: {}]   ;;  %s1283_s11 = inlined_call_operand.hbm [shape: f32[32,32], index: 11, kind: input, shape index: {}]   ;;  %s1284_s12 = inlined_call_operand.vmem [shape: f32[1,32], index: 12, kind: input, shape index: {}]   ;;  %s1285_s13 = inlined_call_operand.vmem [shape: f32[1,32], index: 13, kind: input, shape index: {}]   ;;  %s1286_s14 = inlined_call_operand.<no memory space> [shape: f32[1,1], index: 14, kind: input, shape index: {}]   ;;  %s1287_s15 = inlined_call_operand.hbm [shape: f32[2,8], index: 15, kind: output, shape index: {}]  }
   0x1   :  { %v20_v0 = vstv %s1286_s14 }
   0x2   :  { %21 = vst [vmem:[#allocation2] sm:$0x1] %v20_v0 }
   0x3   :  { %22 = vsyncpa [#allocation4], 0 }
   0x4   :  { %23 = vsyncpa [#allocation7], 0 }
   0x5   :  { %24 = vsyncpa [#allocation10], 0 }
   0x6   :  { %25 = vsyncpa [#allocation5], 0  ;;  %s1070_s20 = smov [#allocation6]   ;;  %s1071_s22 = smov [#allocation9]  }
   0x7   :  { %s46_s21 = sshll.u32 %s1070_s20, 4  ;;  %s73_s23 = sshll.u32 %s1071_s22, 4  ;;  %s47_s21 = int_to_ptr.vmem [resolvable:$true] %s46_s21  ;;  %s74_s23 = int_to_ptr.vmem [resolvable:$true] %s73_s23 }
   0x8   :  { %s950_s24 = scalar_lea.vmem %s47_s21, 16  ;;  %s954_s25 = scalar_lea.vmem %s47_s21, 32 }
   0x9   :  { %p951_p0 = scmp.ne.s32.totalorder %s47_s21, %s950_s24  ;;  %p955_p1 = scmp.lt.s32.totalorder %s47_s21, %s47_s21 }
   0xa   :  { %p956_p2 = scmp.lt.s32.totalorder %s954_s25, %s950_s24 }
   0xc   :  { %p957_p3 = por %p956_p2, %p955_p1 }
   0xe   :  { %p958_p4 = pnand %p957_p3, %p951_p0 }
  0x10   :  { %961 = shalt.err (!%p958_p4)
}
  0x11   :  { %49 = dma.hbm_to_vmem [thread:$0]  %s1275_s3, 16, %s47_s21, [#allocation7]  }
  0x12   :  { %s970_s27 = scalar_lea.vmem %s74_s23, 512  ;;  %p975_p6 = scmp.lt.s32.totalorder %s74_s23, %s74_s23 }
  0x13   :  { %p971_p5 = scmp.ne.s32.totalorder %s74_s23, %s970_s27  ;;  %p976_p7 = scmp.lt.s32.totalorder %s970_s27, %s970_s27 }
  0x15   :  { %p977_p8 = por %p976_p7, %p975_p6 }
  0x17   :  { %p978_p9 = pnand %p977_p8, %p971_p5 }
  0x19   :  { %981 = shalt.err (!%p978_p9)
}
  0x1a   :  { %s1072_s28 = smov 128   ;;  %s1073_s29 = smov 8  }
  0x1b   :  { %79 = dma.hbm_to_vmem [thread:$0]  %s1281_s9, 512, %s74_s23, [#allocation10], %s1072_s28, %s1072_s28, %s1073_s29  }
  0x1c   :  { %s1074_s17 = smov [#allocation3]   ;;  %s1075_s19 = smov [#allocation8]  }
  0x1d   :  { %s36_s18 = sshll.u32 %s1074_s17, 4  ;;  %s58_s3 = sshll.u32 %s1075_s19, 4  ;;  %s37_s18 = int_to_ptr.vmem [resolvable:$true] %s36_s18  ;;  %s59_s3 = int_to_ptr.vmem [resolvable:$true] %s58_s3 }
  0x1e   :  { %s990_s20 = scalar_lea.vmem %s37_s18, 64  ;;  %p995_p11 = scmp.lt.s32.totalorder %s37_s18, %s37_s18 }
  0x1f   :  { %p991_p10 = scmp.ne.s32.totalorder %s37_s18, %s990_s20  ;;  %p996_p12 = scmp.lt.s32.totalorder %s990_s20, %s990_s20 }
  0x21   :  { %p997_p13 = por %p996_p12, %p995_p11 }
  0x23   :  { %p998_p0 = pnand %p997_p13, %p991_p10 }
  0x25   :  { %1001 = shalt.err (!%p998_p0)
}
  0x26   :  { %39 = dma.hbm_to_vmem [thread:$0]  %s1274_s2, 64, %s37_s18, [#allocation4]  }
  0x27   :  { %s1010_s24 = scalar_lea.vmem %s59_s3, 16  ;;  %s1014_s9 = scalar_lea.vmem %s59_s3, 32 }
  0x28   :  { %p1011_p1 = scmp.ne.s32.totalorder %s59_s3, %s1010_s24  ;;  %p1015_p2 = scmp.lt.s32.totalorder %s59_s3, %s59_s3 }
  0x29   :  { %p1016_p3 = scmp.lt.s32.totalorder %s1014_s9, %s1010_s24 }
  0x2b   :  { %p1017_p4 = por %p1016_p3, %p1015_p2 }
  0x2d   :  { %p1018_p5 = pnand %p1017_p4, %p1011_p1 }
  0x2f   :  { %1021 = shalt.err (!%p1018_p5)
}
  0x30   :  { %61 = dma.hbm_to_vmem [thread:$0]  %s1277_s5, 16, %s59_s3, [#allocation7]  }
  0x31   :  { %s1076_s14 = smov [#allocation11]  }
  0x32   :  { %s87_s26 = sshll.u32 %s1076_s14, 4  ;;  %s88_s26 = int_to_ptr.vmem [resolvable:$true] %s87_s26 }
  0x33   :  { %s1030_s27 = scalar_lea.vmem %s88_s26, 512  ;;  %p1035_p7 = scmp.lt.s32.totalorder %s88_s26, %s88_s26 }
  0x34   :  { %p1031_p6 = scmp.ne.s32.totalorder %s88_s26, %s1030_s27  ;;  %p1036_p8 = scmp.lt.s32.totalorder %s1030_s27, %s1030_s27 }
  0x36   :  { %p1037_p9 = por %p1036_p8, %p1035_p7 }
  0x38   :  { %p1038_p10 = pnand %p1037_p9, %p1031_p6 }
  0x3a   :  { %1041 = shalt.err (!%p1038_p10)
}
  0x3b   :  { %93 = dma.hbm_to_vmem [thread:$0]  %s1283_s11, 512, %s88_s26, [#allocation10], %s1072_s28, %s1072_s28, %s1073_s29  }
  0x3c   :  { %1062 = dma.done.wait [#allocation4], 64  }
  0x3d   :  { %1063 = vsyncadd [#allocation4], 4294967232 }
  0x3e   :  { %1064 = dma.done.wait [#allocation7], 32  }
  0x3f   :  { %1065 = vsyncadd [#allocation7], 4294967264 }
  0x40   :  { %1066 = dma.done.wait [#allocation10], 1024  }
  0x41   :  { %1067 = vsyncadd [#allocation10], 4294966272  ;;  %vm142_vm0 = vcmask 1042432   ;;  %vm129_vm1 = vcmask 23552   ;;  %v121_v1 = vld [vmem:[#allocation3] sm:$0x7] }
  0x42   :  { %v115_v2 = vld [vmem:[%s1273_s1] sm:$0xff]  ;;  %v116_v3 = vld [vmem:[%s1273_s1 + $0x8] sm:$0xff]  ;;  %868 = vmatprep.subr.msk.mxu1 %vm142_vm0, %v121_v1  ;;  %v117_v4 = vld [vmem:[%s1273_s1 + $0x10] sm:$0xff]  ;;  %vm246_vm2 = vcmask 261120   ;;  %v1077_v23 = vmov 0.0   ;;  %vm1078_vm3 = vmmov 0  }
  0x43   :  { %870 = vmatprep.mubr.msk.f32.mxu1 %vm129_vm1, %v115_v2  ;;  %v238_v5 = vld [vmem:[%s1276_s4 + $0x18] sm:$0xff]  ;;  %869 = vmatpush3.msk.msra.mxu1 %vm142_vm0, %v121_v1  ;;  %v237_v7 = vld [vmem:[%s1276_s4 + $0x10] sm:$0xff]  ;;  %v236_v8 = vld [vmem:[%s1276_s4 + $0x8] sm:$0xff]  ;;  %vm379_vm4 = vcmask 1041409   ;;  %vm794_vm5 = vcmask 58368  }
  0x44   :  { %871 = vmatmul.mubr.msk.f32.vlgmr.msra.gmra.mxu1 %vm129_vm1, %v116_v3  ;;  %876 = vmatprep.subr.mxu1 %v238_v5  ;;  %v118_v6 = vld [vmem:[%s1273_s1 + $0x18] sm:$0xff]  ;;  %v235_v9 = vld [vmem:[%s1276_s4] sm:$0xff]  ;;  %v368_v25 = vld [vmem:[%s1278_s6 + $0x10] sm:$0xff] }
  0x45   :  { %873 = vmatprep.mubr.msk.f32.mxu1 %vm129_vm1, %v117_v4  ;;  %877 = vmatpush3.msra.mxu1 %v238_v5  ;;  %v813_v10 = vld [vmem:[#allocation6] ss:$0 sm:$0xff]  ;;  %v369_v24 = vld [vmem:[%s1278_s6 + $0x18] sm:$0xff]  ;;  %v367_v26 = vld [vmem:[%s1278_s6 + $0x8] sm:$0xff] }
  0x46   :  { %878 = vmatprep.subr.mxu1 %v237_v7  ;;  %890 = vmatprep.subr.mxu0 %v1077_v23  ;;  %v366_v27 = vld [vmem:[%s1278_s6] sm:$0xff]  ;;  %v454_v30 = vld [vmem:[#allocation9 + $0x8] sm:$0xff]  ;;  %v453_v63 = vld [vmem:[#allocation9] sm:$0xff] }
  0x47   :  { %879 = vmatpush3.msra.mxu1 %v237_v7  ;;  %891 = vmatpush3.msra.mxu0 %v369_v24  ;;  %v456_v28 = vld [vmem:[#allocation9 + $0x18] sm:$0xff]  ;;  %v455_v29 = vld [vmem:[#allocation9 + $0x10] sm:$0xff] }
  0x48   :  { %874 = vmatmul.mubr.msk.f32.gmra.mxu1 %vm129_vm1, %v118_v6  ;;  %880 = vmatprep.subr.mxu1 %v236_v8  ;;  %v819_v31 = vld [vmem:[#allocation8] ss:$0 sm:$0xff]  ;;  %v537_v0 = vld [vmem:[%s1280_s8] sm:$0x7]  ;;  %v120_v2 = vld [vmem:[%s1272_s0 + $0x8] sm:$0xff] }
  0x49   :  { %881 = vmatpush3.msra.mxu1 %v236_v8  ;;  %892 = vmatprep.subr.mxu0 %v1077_v23  ;;  %v119_v1 = vld [vmem:[%s1272_s0] sm:$0xff] }
  0x4a   :  { %882 = vmatprep.subr.mxu1 %v235_v9  ;;  %898 = vmatprep.mubr.msk.f32.mxu0 %vm1078_vm3, %v1077_v23  ;;  %v824_v3 = vld [vmem:[%s1279_s7] ss:$0 sm:$0xff]  ;;  %v662_v7 = vld [vmem:[#allocation11 + $0x18] sm:$0xff] }
  0x4b   :  { %883 = vmatpush3.msra.mxu1 %v235_v9  ;;  %893 = vmatpush3.msra.mxu0 %v368_v25  ;;  %v661_v8 = vld [vmem:[#allocation11 + $0x10] sm:$0xff]  ;;  %v660_v9 = vld [vmem:[#allocation11 + $0x8] sm:$0xff] }
  0x4c   :  { %901 = vmatprep.subr.mxu1 %v1077_v23  ;;  %894 = vmatprep.subr.mxu0 %v1077_v23 }
  0x4d   :  { %895 = vmatpush3.msra.mxu0 %v367_v26 }
  0x4e   :  { %896 = vmatprep.subr.mxu0 %v1077_v23 }
  0x4f   :  { %897 = vmatpush3.msra.mxu0 %v366_v27 }
  0x50   :  { %912 = vmatprep.subr.msk.mxu0 %vm142_vm0, %v537_v0 }
 0x104   :  { %v872_v11 = vpop.f32.mrf.mxu1 }
 0x105   :  { %v218_v12 = vadd.f32 %v872_v11, %v813_v10  ;;  %v1079_v11 = vmov 1966171168  }
 0x106   :  { %v212_v13 = vpop.f32.mrf.mxu1 }
 0x107   :  { %v213_v14 = vadd.f32 %v813_v10, %v212_v13  ;;  %v232_v17 = vmax.f32 %v218_v12, 0.0  ;;  %v624_v12 = vunpack.c.l.s4 %v1079_v11  ;;  %v626_v13 = vlaneseq }
 0x108   :  { %v875_v15 = vpop.f32.mrf.mxu1 }
 0x109   :  { %v231_v16 = vmax.f32 %v213_v14, 0.0  ;;  %v228_v18 = vadd.f32 %v875_v15, %v813_v10  ;;  %v625_v14 = vunpack.c.0.s8 %v624_v12  ;;  %v627_v15 = vshrl.u32 %v626_v13, 7 }
 0x10a   :  { %v222_v19 = vpop.f32.mrf.mxu1 }
 0x10b   :  { %v223_v20 = vadd.f32 %v813_v10, %v222_v19  ;;  %884 = vmatprep.mubr.msk.f32.mxu1 %vm246_vm2, %v231_v16  ;;  %v234_v22 = vmax.f32 %v228_v18, 0.0  ;;  %v659_v10 = vld [vmem:[#allocation11] sm:$0xff]  ;;  %v826_v16 = vld [vmem:[%s1282_s10] ss:$0 sm:$0xff] }
 0x10c   :  { %885 = vmatmul.mubr.msk.f32.vlgmr.msra.gmra.mxu1 %vm246_vm2, %v232_v17  ;;  %v628_v17 = vsub.s32 %v625_v14, %v627_v15 }
 0x10d   :  { %v233_v21 = vmax.f32 %v223_v20, 0.0  ;;  %902 = vmatpush3.msra.mxu1 %v456_v28 }
 0x10e   :  { %903 = vmatprep.subr.mxu1 %v1077_v23 }
 0x10f   :  { %887 = vmatprep.mubr.msk.f32.mxu1 %vm246_vm2, %v233_v21  ;;  %904 = vmatpush3.msra.mxu1 %v455_v29 }
 0x110   :  { %888 = vmatmul.mubr.msk.f32.gmra.mxu1 %vm246_vm2, %v234_v22  ;;  %905 = vmatprep.subr.mxu1 %v1077_v23 }
 0x111   :  { %909 = vmatprep.mubr.msk.f32.mxu1 %vm1078_vm3, %v1077_v23  ;;  %906 = vmatpush3.msra.mxu1 %v454_v30 }
 0x112   :  { %907 = vmatprep.subr.mxu1 %v1077_v23  ;;  %v647_v23 = vsub.s32 0, %v627_v15 }
 0x113   :  { %908 = vmatpush3.msra.mxu1 %v453_v63 }
 0x1cc   :  { %v886_v32 = vpop.f32.mrf.mxu1 }
 0x1cd   :  { %v331_v33 = vadd.f32 %v886_v32, %v819_v31 }
 0x1ce   :  { %v325_v34 = vpop.f32.mrf.mxu1 }
 0x1cf   :  { %v345_v35 = vmax.f32 %v331_v33, 0.0  ;;  %v326_v36 = vadd.f32 %v819_v31, %v325_v34  ;;  %v835_v34 = vld [vmem:[#allocation2] ss:$0 sm:$0xff] }
 0x1d0   :  { %v889_v37 = vpop.f32.mrf.mxu1 }
 0x1d1   :  { %v344_v38 = vmax.f32 %v326_v36, 0.0  ;;  %v341_v39 = vadd.f32 %v889_v37, %v819_v31  ;;  %v349_v41 = vsel %vm246_vm2, %v345_v35, -inf  ;;  %v1080_v35 = vmov 0   ;;  %v831_v36 = vld [vmem:[%s1284_s12] ss:$0 sm:$0xff]  ;;  %s1081_s12 = smov [#allocation12]  }
 0x1d2   :  { %v335_v40 = vpop.f32.mrf.mxu1  ;;  %940 = vset.pattern.permute.xlu1 %v1080_v35  ;;  %941 = vset.pattern.permute.xlu0 %v1080_v35  ;;  %s802_s21 = sshll.u32 %s1081_s12, 4  ;;  %s803_s21 = int_to_ptr.vmem [resolvable:$true] %s802_s21 }
 0x1d3   :  { %v348_v42 = vsel %vm246_vm2, %v344_v38, -inf  ;;  %v347_v43 = vmax.f32 %v341_v39, 0.0  ;;  %v336_v44 = vadd.f32 %v819_v31, %v335_v40  ;;  %775 = vperm.xlu1 %940, %v835_v34   ;;  %p1047_p12 = scmp.lt.s32.totalorder %s803_s21, %s803_s21 }
 0x1d4   :  { %v350_v45 = vmax.f32 %v348_v42, %v349_v41 }
 0x1d5   :  { %v346_v46 = vmax.f32 %v336_v44, 0.0  ;;  %v358_v48 = vsel %vm246_vm2, %v347_v43, -inf  ;;  %v834_v43 = vld [vmem:[%s1285_s13] ss:$0 sm:$0xff]  ;;  %s1042_s13 = scalar_lea.vmem %s803_s21, 32 }
 0x1d6   :  { %v351_v47 = vrot.slane %v350_v45, 4  ;;  %p1043_p11 = scmp.ne.s32.totalorder %s803_s21, %s1042_s13  ;;  %p1048_p13 = scmp.lt.s32.totalorder %s1042_s13, %s1042_s13 }
 0x1d7   :  { %v357_v49 = vsel %vm246_vm2, %v346_v46, -inf }
 0x1d8   :  { %v352_v50 = vmax.f32 %v350_v45, %v351_v47  ;;  %v359_v51 = vmax.f32 %v357_v49, %v358_v48  ;;  %v783_v48 = vand.u32 127, %v626_v13  ;;  %p1049_p0 = por %p1048_p13, %p1047_p12 }
 0x1da   :  { %v353_v52 = vrot.slane %v352_v50, 2  ;;  %v360_v53 = vrot.slane %v359_v51, 4  ;;  %p1050_p1 = pnand %p1049_p0, %p1043_p11 }
 0x1dc   :  { %v354_v54 = vmax.f32 %v352_v50, %v353_v52  ;;  %v361_v55 = vmax.f32 %v359_v51, %v360_v53  ;;  %v786_v51 = vsub.s32 %v783_v48, %v627_v15 }
 0x1de   :  { %v362_v56 = vrot.slane %v361_v55, 2  ;;  %v355_v58 = vrot.slane %v354_v54, 1 }
 0x1e0   :  { %v363_v57 = vmax.f32 %v361_v55, %v362_v56  ;;  %v356_v60 = vmax.f32 %v354_v54, %v355_v58 }
 0x1e2   :  { %v364_v59 = vrot.slane %v363_v57, 1 }
 0x1e4   :  { %v365_v61 = vmax.f32 %v363_v57, %v364_v59 }
 0x1e6   :  { %v380_v62 = vsel %vm379_vm4, %v365_v61, %v356_v60 }
 0x1e7   :  { %899 = vmatmul.mubr.msk.f32.vlgmr.msra.gmra.mxu0 %vm246_vm2, %v380_v62 }
 0x1e8   :  { %914 = vmatprep.mubr.msk.f32.mxu0 %vm129_vm1, %v119_v1  ;;  %913 = vmatpush3.msk.msra.mxu0 %vm142_vm0, %v537_v0 }
 0x1e9   :  { %917 = vmatprep.subr.mxu0 %v662_v7 }
 0x1eb   :  { %915 = vmatmul.mubr.msk.f32.vlgmr.msra.gmra.mxu0 %vm129_vm1, %v120_v2 }
 0x1ec   :  { %918 = vmatpush3.msra.mxu0 %v662_v7 }
 0x1ed   :  { %919 = vmatprep.subr.mxu0 %v661_v8 }
 0x1ee   :  { %920 = vmatpush3.msra.mxu0 %v661_v8 }
 0x1ef   :  { %921 = vmatprep.subr.mxu0 %v660_v9 }
 0x1f0   :  { %922 = vmatpush3.msra.mxu0 %v660_v9 }
 0x1f1   :  { %923 = vmatprep.subr.mxu0 %v659_v10 }
 0x1f2   :  { %924 = vmatpush3.msra.mxu0 %v659_v10 }
 0x24e   :  { %v776_v49 = vpop.permute.xlu1 %775 }
 0x2a7   :  { %v449_v4 = vpop.f32.mrf.mxu0 }
 0x2a8   :  { %v450_v5 = vadd.f32 %v824_v3, %v449_v4 }
 0x2a9   :  { %v900_v6 = vpop.f32.mrf.mxu0 }
 0x2aa   :  { %910 = vmatmul.mubr.msk.f32.vlgmr.msra.gmra.mxu1 %vm246_vm2, %v450_v5 }
 0x2ab   :  { %v916_v21 = vpop.f32.mrf.mxu0 }
 0x2ad   :  { %v613_v26 = vpop.f32.mrf.mxu0 }
 0x36a   :  { %v533_v18 = vpop.f32.mrf.mxu1 }
 0x36b   :  { %v534_v19 = vadd.f32 %v826_v16, %v533_v18 }
 0x36c   :  { %v911_v20 = vpop.f32.mrf.mxu1 }
 0x36d   :  { %v629_v22 = vrot.slane %v534_v19, %v628_v17 }
 0x36f   :  { %v630_v24 = vcombine.high %v629_v22, %v629_v22  ;;  %v637_v25 = vrot.slane %v629_v22, %v628_v17 }
 0x371   :  { %v644_v27 = vrot.slane %v630_v24, %v628_v17  ;;  %v648_v28 = vrot.slane %v637_v25, %v647_v23 }
 0x373   :  { %v652_v29 = vrot.slane %v644_v27, %v647_v23  ;;  %v655_v30 = vadd.f32 %v648_v28, %v613_v26 }
 0x375   :  { %v656_v31 = vadd.f32 %v916_v21, %v652_v29  ;;  %v657_v32 = vmax.f32 %v655_v30, 0.0 }
 0x377   :  { %v658_v33 = vmax.f32 %v656_v31, 0.0  ;;  %925 = vmatprep.mubr.msk.f32.mxu0 %vm246_vm2, %v657_v32 }
 0x379   :  { %926 = vmatmul.mubr.msk.f32.vlgmr.msra.gmra.mxu0 %vm246_vm2, %v658_v33 }
 0x439   :  { %v927_v37 = vpop.f32.mrf.mxu0 }
 0x43a   :  { %v748_v38 = vadd.f32 %v927_v37, %v831_v36 }
 0x43b   :  { %v742_v39 = vpop.f32.mrf.mxu0 }
 0x43c   :  { %v743_v40 = vadd.f32 %v831_v36, %v742_v39  ;;  %v752_v41 = vmax.f32 %v748_v38, 0.0 }
 0x43e   :  { %v751_v42 = vmax.f32 %v743_v40, 0.0  ;;  %v761_v46 = vmul.f32 %v834_v43, %v752_v41 }
 0x440   :  { %v760_v44 = vmul.f32 %v834_v43, %v751_v42  ;;  %v765_v47 = vsel %vm246_vm2, %v761_v46, 0.0 }
 0x442   :  { %v762_v45 = vsel %vm246_vm2, %v760_v44, 0.0 }
 0x443   :  { %763 = vadd.xlane.f32.xlu0 %v762_v45 }
 0x447   :  { %766 = vadd.xlane.f32.xlu0 %v765_v47 }
 0x4cc   :  { %v764_v50 = vpop.xlane.xlu0 %763 }
 0x4cd   :  { %v778_v52 = vadd.f32 %v776_v49, %v764_v50 }
 0x4cf   :  { %v787_v55 = vrot.slane %v778_v52, %v786_v51 }
 0x4d0   :  { %v767_v53 = vpop.xlane.xlu0 %766 }
 0x4d1   :  { %v779_v54 = vadd.f32 %v776_v49, %v767_v53 }
 0x4d3   :  { %v791_v56 = vrot.slane %v779_v54, %v786_v51 }
 0x4d5   :  { %v792_v57 = vsel %vm379_vm4, %v791_v56, %v787_v55 }
 0x4d6   :  { %795 = vst.msk [vmem:[#allocation12] sm:$0x3] %vm794_vm5, %v792_v57 }
 0x4d7   :  { %1053 = shalt.err (!%p1050_p1)
}
 0x4d8   :  { %805 = dma.vmem_to_hbm [thread:$0]  %s803_s21, 32, %s1287_s15, [#allocation5]  }
 0x4d9   :  { %1068 = dma.done.wait [#allocation5], 32  }
 0x4da   :  { %1069 = vsyncadd [#allocation5], 4294967264 }
 0x4db   :  { %809 = vsyncpa [#allocation4], 1 }
 0x4dc   :  { %810 = vsyncpa [#allocation7], 1 }
 0x4dd   :  { %811 = vsyncpa [#allocation10], 1 }
 0x4de   :  { %812 = vsyncpa [#allocation5], 1 }

</bundles_post_ra>
